<compile_context>
chip_gen: v5e
topology: v5e:2x2
jax: 0.10.0
libtpu: 0.0.40
codegen_flags: <defaults>
</compile_context>

<pallas_src>
from functools import lru_cache

import numpy as np
import jax
import jax.numpy as jnp
from jax.experimental import pallas as pl
from jax.experimental.pallas import tpu as pltpu


# ----------------------------------------------------------------------------
# Helpers
# ----------------------------------------------------------------------------
def _round_up(x, m):
    return ((x + m - 1) // m) * m


def _adaptive_pool_cols(H, W, n):
    """Columns for AdaptiveAvgPool2d((n, 1)) on an (H, W) map -> (H*W, n)."""
    mat = np.zeros((H, n), dtype=np.float32)
    for i in range(n):
        start = (i * H) // n
        end = -((-(i + 1) * H) // n)  # ceil((i+1)*H/n), matches PyTorch bins
        mat[start:end, i] = 1.0 / float(end - start)
    full = np.repeat(mat[:, None, :], W, axis=1) / float(W)  # (H, W, n)
    return full.reshape(H * W, n)


def _global_pool_cols(H, W):
    """Column for AdaptiveAvgPool2d((1, 1)) -> (H*W, 1)."""
    return np.full((H * W, 1), 1.0 / float(H * W), dtype=np.float32)


@lru_cache(maxsize=None)
def _pool_weight_np(H, W, num2, num3, k_pad):
    """Fused pooling matrix: [global | num2 parts | num3 parts | zero pad]."""
    w = np.concatenate(
        [
            _global_pool_cols(H, W),
            _adaptive_pool_cols(H, W, num2),
            _adaptive_pool_cols(H, W, num3),
        ],
        axis=1,
    ).astype(np.float32)
    k = w.shape[1]
    if k < k_pad:
        w = np.concatenate([w, np.zeros((H * W, k_pad - k), np.float32)], axis=1)
    return w


def _pool_weight(H, W, num2, num3, dtype):
    k_pad = _round_up(1 + num2 + num3, 8)
    w = _pool_weight_np(H, W, num2, num3, k_pad)  # cached host-side build
    dt = jnp.dtype(dtype)
    # Feed w in the activation dtype for sub-f32 float activations so the big
    # x tile is not implicitly promoted to f32; accumulation stays f32 via
    # preferred_element_type inside the kernel.
    if dt in (jnp.dtype(jnp.bfloat16), jnp.dtype(jnp.float16)):
        return jnp.asarray(w, dtype=dt)
    return jnp.asarray(w)


def _sublane_pack(itemsize):
    """Row packing granularity: 8 for 4-byte, 16 for 2-byte, 32 for 1-byte."""
    return 8 * max(1, 4 // int(itemsize))


def _vmem_limit_bytes():
    """Generation-aware scoped-VMEM limit (v7x: 64 MiB phys, v5e/v6e: 128 MiB)."""
    try:
        cap = int(pltpu.get_tpu_info().vmem_capacity_bytes)
    except Exception:
        cap = 64 << 20  # conservative (assume v7x-sized VMEM)
    return (64 << 20) if cap >= (100 << 20) else (48 << 20)


def _choose_tile_m(M, N, K, in_bytes, out_bytes, w_bytes, n_branches,
                   budget_bytes, pack):
    """Largest row tile whose double-buffered footprint fits the budget."""
    n_lane = max(_round_up(N, 128), 128)   # VMEM lane padding of x blocks
    k_lane = max(_round_up(K, 128), 128)   # VMEM lane padding of output block
    w_foot = _round_up(N, 8) * k_lane * w_bytes  # resident pooling matrix

    def footprint(t):
        return (2 * n_branches * t * n_lane * in_bytes      # x, double-buffered
                + 2 * n_branches * t * k_lane * out_bytes   # merged out, db
                + w_foot)

    tile = 4096
    while tile > pack and footprint(tile) > budget_bytes:
        tile //= 2
    tile = max(pack, min(tile, _round_up(M, pack)))
    # Guarantee >= 2 grid steps so the "parallel" axis can shard across v7x's
    # two TensorCores for small M (harmless on single-TC v5e/v6e).
    if M > pack:
        tile = min(tile, max(pack, _round_up(-(-M // 2), pack)))
    return tile


# ----------------------------------------------------------------------------
# Pallas kernel: for each branch b in the group, out[b] = x_b @ w
# ----------------------------------------------------------------------------
def _make_group_kernel(n_branches):
    def kernel(*refs):
        x_refs = refs[:n_branches]
        w_ref = refs[n_branches]
        o_ref = refs[n_branches + 1]          # merged (n, tile_m, K) output
        w = w_ref[...]
        for b, x_ref in enumerate(x_refs):
            acc = jnp.dot(x_ref[...], w, preferred_element_type=jnp.float32)
            o_ref[b] = acc.astype(o_ref.dtype)

    return kernel


def _pallas_pool_group(xs, w):
    """xs: list of (M, N) arrays (same shape/dtype), w: (N, K).

    Returns list of (M, K) arrays (same dtype as xs), one per input.
    """
    n = len(xs)
    M, N = xs[0].shape
    K = w.shape[1]
    dtype = xs[0].dtype
    in_bytes = jnp.dtype(dtype).itemsize
    out_bytes = in_bytes
    w_bytes = jnp.dtype(w.dtype).itemsize
    pack = _sublane_pack(in_bytes)

    vmem_limit = _vmem_limit_bytes()
    budget = vmem_limit - (16 << 20)          # headroom for pipeline bookkeeping
    tile_m = _choose_tile_m(M, N, K, in_bytes, out_bytes, w_bytes, n, budget, pack)
    grid = (pl.cdiv(M, tile_m),)

    x_spec = pl.BlockSpec((tile_m, N), lambda i: (i, 0))
    w_spec = pl.BlockSpec((N, K), lambda i: (0, 0))           # resident across grid
    o_spec = pl.BlockSpec((n, tile_m, K), lambda i: (0, i, 0))  # one merged DMA/step

    cost = pl.CostEstimate(
        flops=2 * n * M * N * K,
        transcendentals=0,
        bytes_accessed=n * M * N * in_bytes + N * K * w_bytes + n * M * K * out_bytes,
    )

    out = pl.pallas_call(
        _make_group_kernel(n),
        out_shape=jax.ShapeDtypeStruct((n, M, K), dtype),
        grid=grid,
        in_specs=[x_spec] * n + [w_spec],
        out_specs=o_spec,
        compiler_params=pltpu.CompilerParams(
            dimension_semantics=("parallel",),   # rows independent -> megacore
            vmem_limit_bytes=vmem_limit,         # generation-aware cap
        ),
        cost_estimate=cost,
    )(*xs, w)

    return [out[b] for b in range(n)]


# ----------------------------------------------------------------------------
# MGNPooling forward
# ----------------------------------------------------------------------------
def mgn_pooling(inputs, num2=2, num3=3):
    assert isinstance(inputs, (list, tuple))
    assert len(inputs) == 3
    ps = list(inputs)

    # Group branches with identical (shape, dtype) so they share one fused
    # pallas_call (no concatenate copy -> no extra HBM pass).
    groups = {}
    for idx, p in enumerate(ps):
        key = (tuple(p.shape), jnp.dtype(p.dtype))
        groups.setdefault(key, []).append(idx)

    pooled = [None, None, None]  # per-branch (B*C, K) results
    for (shape, dtype), idxs in groups.items():
        B, C, H, W = shape
        w = _pool_weight(H, W, num2, num3, dtype)  # (H*W, 8), cached
        xs = [ps[i].reshape(B * C, H * W) for i in idxs]  # native dtype, no upcast
        outs = _pallas_pool_group(xs, w)
        for i, o in zip(idxs, outs):
            pooled[i] = o

    p1, p2, p3 = ps
    o1, o2, o3 = pooled
    B1, C1 = p1.shape[:2]
    B2, C2 = p2.shape[:2]
    B3, C3 = p3.shape[:2]

    # Fused weight columns: [0]=global, [1:1+num2]=p2 parts, [1+num2:1+num2+num3]=p3 parts
    p1_global = o1[:, 0:1].reshape(B1, C1, 1, 1)
    p2_global = o2[:, 0:1].reshape(B2, C2, 1, 1)
    p3_global = o3[:, 0:1].reshape(B3, C3, 1, 1)
    p2_parts = o2[:, 1:1 + num2].reshape(B2, C2, num2, 1)
    p3_parts = o3[:, 1 + num2:1 + num2 + num3].reshape(B3, C3, num3, 1)

    return (p1_global, p2_global, p3_global, p2_parts, p3_parts)


# ----------------------------------------------------------------------------
# Pure-JAX reference (for correctness check)
# ----------------------------------------------------------------------------
def _ref_adaptive_pool(x, n):
    B, C, H, W = x.shape
    outs = []
    for i in range(n):
        start = (i * H) // n
        end = -((-(i + 1) * H) // n)
        outs.append(jnp.mean(x[:, :, start:end, :], axis=(2, 3), keepdims=True))
    return jnp.concatenate(outs, axis=2)


def _ref_mgn(inputs, num2=2, num3=3):
    p1, p2, p3 = inputs
    return (
        jnp.mean(p1, axis=(2, 3), keepdims=True),
        jnp.mean(p2, axis=(2, 3), keepdims=True),
        jnp.mean(p3, axis=(2, 3), keepdims=True),
        _ref_adaptive_pool(p2, num2),
        _ref_adaptive_pool(p3, num3),
    )


if __name__ == "__main__":
    key = jax.random.PRNGKey(0)
    k1, k2, k3 = jax.random.split(key, 3)
    # Small NCHW feature maps consistent with the module.  p1/p2 share a shape
    # (exercises the fused multi-branch path); p3 differs (single-branch path).
    p1 = jax.random.normal(k1, (2, 4, 16, 16), dtype=jnp.float32)
    p2 = jax.random.normal(k2, (2, 4, 16, 16), dtype=jnp.float32)
    p3 = jax.random.normal(k3, (2, 4, 8, 8), dtype=jnp.float32)

    outs = mgn_pooling((p1, p2, p3), num2=2, num3=3)
    outs = jax.block_until_ready(outs)

    refs = _ref_mgn((p1, p2, p3), num2=2, num3=3)
    for o, r in zip(outs, refs):
        assert o.shape == r.shape, (o.shape, r.shape)
        np.testing.assert_allclose(np.asarray(o), np.asarray(r), rtol=1e-5, atol=1e-5)

    print("KERNEL_OK")
</pallas_src>

<mosaic_0001>
module attributes {stable_mosaic.version = 11 : i64} {
  func.func @kernel(%arg0: i32, %arg1: memref<8x256xf32, #tpu.memory_space<vmem>>, %arg2: memref<8x256xf32, #tpu.memory_space<vmem>>, %arg3: memref<256x8xf32, #tpu.memory_space<vmem>>, %arg4: memref<2x8x8xf32, #tpu.memory_space<vmem>>) attributes {dimension_semantics = [#tpu.dimension_semantics<parallel>], iteration_bounds = array<i64: 1>, scalar_prefetch = 0 : i64, scratch_operands = 0 : i64, tpu.core_type = #tpu.core_type<tc>, window_params = [{transform_indices = @transform_0, window_bounds = array<i64: 8, 256>}, {transform_indices = @transform_1, window_bounds = array<i64: 8, 256>}, {pipeline_mode = #tpu.pipeline_mode<synchronous>, transform_indices = @transform_2, window_bounds = array<i64: 256, 8>}, {transform_indices = @transform_3, window_bounds = array<i64: 2, 8, 8>}]} {
    %c0 = arith.constant 0 : index
    %c0_0 = arith.constant 0 : index
    %0 = vector.load %arg3[%c0, %c0_0] : memref<256x8xf32, #tpu.memory_space<vmem>>, vector<256x8xf32>
    %c0_1 = arith.constant 0 : index
    %c0_2 = arith.constant 0 : index
    %1 = vector.load %arg1[%c0_1, %c0_2] : memref<8x256xf32, #tpu.memory_space<vmem>>, vector<8x256xf32>
    %cst = arith.constant dense<0.000000e+00> : vector<8x8xf32>
    %2 = tpu.matmul %1, %0, %cst {dimension_numbers = #tpu.dot_dimension_numbers<[1], [0], [0], [1], [0, 0, 1, 1], [], []>} : vector<8x256xf32>, vector<256x8xf32>, vector<8x8xf32> -> vector<8x8xf32>
    %c0_3 = arith.constant 0 : index
    %c0_4 = arith.constant 0 : index
    %c0_5 = arith.constant 0 : index
    %3 = vector.load %arg4[%c0_3, %c0_4, %c0_5] : memref<2x8x8xf32, #tpu.memory_space<vmem>>, vector<1x8x8xf32>
    %4 = vector.shape_cast %3 : vector<1x8x8xf32> to vector<8x8xf32>
    %5 = vector.shape_cast %2 : vector<8x8xf32> to vector<1x8x8xf32>
    tpu.vector_store %arg4[%c0_3, %c0_4, %c0_5], %5 {strides = array<i32>} : memref<2x8x8xf32, #tpu.memory_space<vmem>>, vector<1x8x8xf32>,
    %c0_6 = arith.constant 0 : index
    %c0_7 = arith.constant 0 : index
    %6 = vector.load %arg2[%c0_6, %c0_7] : memref<8x256xf32, #tpu.memory_space<vmem>>, vector<8x256xf32>
    %cst_8 = arith.constant dense<0.000000e+00> : vector<8x8xf32>
    %7 = tpu.matmul %6, %0, %cst_8 {dimension_numbers = #tpu.dot_dimension_numbers<[1], [0], [0], [1], [0, 0, 1, 1], [], []>} : vector<8x256xf32>, vector<256x8xf32>, vector<8x8xf32> -> vector<8x8xf32>
    %c1 = arith.constant 1 : index
    %c0_9 = arith.constant 0 : index
    %c0_10 = arith.constant 0 : index
    %8 = vector.load %arg4[%c1, %c0_9, %c0_10] : memref<2x8x8xf32, #tpu.memory_space<vmem>>, vector<1x8x8xf32>
    %9 = vector.shape_cast %8 : vector<1x8x8xf32> to vector<8x8xf32>
    %10 = vector.shape_cast %7 : vector<8x8xf32> to vector<1x8x8xf32>
    tpu.vector_store %arg4[%c1, %c0_9, %c0_10], %10 {strides = array<i32>} : memref<2x8x8xf32, #tpu.memory_space<vmem>>, vector<1x8x8xf32>,
    return
  }
  func.func @transform_0(%arg0: i32) -> (i32, i32) {
    %c0_i32 = arith.constant 0 : i32
    %c0_i32_0 = arith.constant 0 : i32
    return %arg0, %c0_i32 : i32, i32
  }
  func.func @transform_1(%arg0: i32) -> (i32, i32) {
    %c0_i32 = arith.constant 0 : i32
    %c0_i32_0 = arith.constant 0 : i32
    return %arg0, %c0_i32 : i32, i32
  }
  func.func @transform_2(%arg0: i32) -> (i32, i32) {
    %c0_i32 = arith.constant 0 : i32
    %c0_i32_0 = arith.constant 0 : i32
    %c0_i32_1 = arith.constant 0 : i32
    return %c0_i32, %c0_i32_0 : i32, i32
  }
  func.func @transform_3(%arg0: i32) -> (i32, i32, i32) {
    %c0_i32 = arith.constant 0 : i32
    %c0_i32_0 = arith.constant 0 : i32
    %c0_i32_1 = arith.constant 0 : i32
    return %c0_i32, %arg0, %c0_i32_0 : i32, i32, i32
  }
}

</mosaic_0001>

<bundles_post_ra>
// kernel: tpu_custom_call.1
= control target key start
LH: loop header
LB: loop body
LE: loop exit
PB: predicated region body
PF: predicated region fallthrough
CT: control target
= control target key end

     0   :  { %s316_s0 = inlined_call_operand.vmem [shape: f32[8,256], index: 0, kind: input, shape index: {}]   ;;  %s317_s1 = inlined_call_operand.vmem [shape: f32[8,256], index: 1, kind: input, shape index: {}]   ;;  %s318_s2 = inlined_call_operand.vmem [shape: f32[256,8], index: 2, kind: input, shape index: {}]   ;;  %s319_s3 = inlined_call_operand.hbm [shape: f32[2,8,8], index: 3, kind: output, shape index: {}]  }
   0x1   :  { %v30_v0 = vld [vmem:[%s318_s2 + $0x78] sm:$0xff]  ;;  %v29_v2 = vld [vmem:[%s318_s2 + $0x70] sm:$0xff]  ;;  %v28_v4 = vld [vmem:[%s318_s2 + $0x68] sm:$0xff] }
   0x2   :  { %v46_v1 = vld [vmem:[%s318_s2 + $0xf8] sm:$0xff]  ;;  %93 = vmatpush.msra.mxu2 %v30_v0  ;;  %v45_v3 = vld [vmem:[%s318_s2 + $0xf0] sm:$0xff]  ;;  %v44_v5 = vld [vmem:[%s318_s2 + $0xe8] sm:$0xff]  ;;  %49 = vmatpush.msra.mxu0 %v30_v0 }
   0x3   :  { %113 = vmatpush.msra.mxu3 %v46_v1  ;;  %69 = vmatpush.msra.mxu1 %v46_v1  ;;  %v27_v6 = vld [vmem:[%s318_s2 + $0x60] sm:$0xff]  ;;  %v26_v8 = vld [vmem:[%s318_s2 + $0x58] sm:$0xff]  ;;  %v25_v10 = vld [vmem:[%s318_s2 + $0x50] sm:$0xff] }
   0x4   :  { %94 = vmatpush.msra.mxu2 %v29_v2  ;;  %v43_v7 = vld [vmem:[%s318_s2 + $0xe0] sm:$0xff]  ;;  %50 = vmatpush.msra.mxu0 %v29_v2  ;;  %v42_v9 = vld [vmem:[%s318_s2 + $0xd8] sm:$0xff]  ;;  %v41_v11 = vld [vmem:[%s318_s2 + $0xd0] sm:$0xff] }
   0x5   :  { %114 = vmatpush.msra.mxu3 %v45_v3  ;;  %70 = vmatpush.msra.mxu1 %v45_v3  ;;  %v24_v12 = vld [vmem:[%s318_s2 + $0x48] sm:$0xff]  ;;  %v23_v14 = vld [vmem:[%s318_s2 + $0x40] sm:$0xff] }
   0x6   :  { %95 = vmatpush.msra.mxu2 %v28_v4  ;;  %51 = vmatpush.msra.mxu0 %v28_v4  ;;  %v40_v13 = vld [vmem:[%s318_s2 + $0xc8] sm:$0xff]  ;;  %v39_v15 = vld [vmem:[%s318_s2 + $0xc0] sm:$0xff] }
   0x7   :  { %115 = vmatpush.msra.mxu3 %v44_v5  ;;  %71 = vmatpush.msra.mxu1 %v44_v5 }
   0x8   :  { %96 = vmatpush.msra.mxu2 %v27_v6  ;;  %52 = vmatpush.msra.mxu0 %v27_v6 }
   0x9   :  { %116 = vmatpush.msra.mxu3 %v43_v7  ;;  %72 = vmatpush.msra.mxu1 %v43_v7 }
   0xa   :  { %97 = vmatpush.msra.mxu2 %v26_v8  ;;  %53 = vmatpush.msra.mxu0 %v26_v8 }
   0xb   :  { %117 = vmatpush.msra.mxu3 %v42_v9  ;;  %73 = vmatpush.msra.mxu1 %v42_v9 }
   0xc   :  { %98 = vmatpush.msra.mxu2 %v25_v10  ;;  %54 = vmatpush.msra.mxu0 %v25_v10 }
   0xd   :  { %118 = vmatpush.msra.mxu3 %v41_v11  ;;  %74 = vmatpush.msra.mxu1 %v41_v11 }
   0xe   :  { %8 = vsyncpa [#allocation3], 0  ;;  %99 = vmatpush.msra.mxu2 %v24_v12  ;;  %v22_v16 = vld [vmem:[%s318_s2 + $0x38] sm:$0xff]  ;;  %55 = vmatpush.msra.mxu0 %v24_v12  ;;  %v21_v18 = vld [vmem:[%s318_s2 + $0x30] sm:$0xff]  ;;  %vm89_vm0 = vcmask 64512   ;;  %s141_s5 = sshll.u32 %s319_s3, 4  ;;  %s142_s5 = int_to_ptr.hbm [resolvable:$true] %s141_s5 }
   0xf   :  { %119 = vmatpush.msra.mxu3 %v40_v13  ;;  %v38_v17 = vld [vmem:[%s318_s2 + $0xb8] sm:$0xff]  ;;  %75 = vmatpush.msra.mxu1 %v40_v13  ;;  %v37_v19 = vld [vmem:[%s318_s2 + $0xb0] sm:$0xff]  ;;  %v20_v20 = vld [vmem:[%s318_s2 + $0x28] sm:$0xff]  ;;  %s184_s6 = smov 8  }
  0x10   :  { %100 = vmatpush.msra.mxu2 %v23_v14  ;;  %56 = vmatpush.msra.mxu0 %v23_v14  ;;  %v36_v21 = vld [vmem:[%s318_s2 + $0xa8] sm:$0xff]  ;;  %v19_v22 = vld [vmem:[%s318_s2 + $0x20] sm:$0xff]  ;;  %v18_v24 = vld [vmem:[%s318_s2 + $0x18] sm:$0xff] }
  0x11   :  { %120 = vmatpush.msra.mxu3 %v39_v15  ;;  %76 = vmatpush.msra.mxu1 %v39_v15  ;;  %v35_v23 = vld [vmem:[%s318_s2 + $0xa0] sm:$0xff]  ;;  %v34_v25 = vld [vmem:[%s318_s2 + $0x98] sm:$0xff]  ;;  %v17_v26 = vld [vmem:[%s318_s2 + $0x10] sm:$0xff] }
  0x12   :  { %101 = vmatpush.msra.mxu2 %v22_v16  ;;  %57 = vmatpush.msra.mxu0 %v22_v16  ;;  %v33_v27 = vld [vmem:[%s318_s2 + $0x90] sm:$0xff]  ;;  %v16_v28 = vld [vmem:[%s318_s2 + $0x8] sm:$0xff]  ;;  %v15_v30 = vld [vmem:[%s318_s2] sm:$0xff] }
  0x13   :  { %121 = vmatpush.msra.mxu3 %v38_v17  ;;  %77 = vmatpush.msra.mxu1 %v38_v17  ;;  %v32_v29 = vld [vmem:[%s318_s2 + $0x88] sm:$0xff]  ;;  %v31_v31 = vld [vmem:[%s318_s2 + $0x80] sm:$0xff] }
  0x14   :  { %102 = vmatpush.msra.mxu2 %v21_v18  ;;  %58 = vmatpush.msra.mxu0 %v21_v18  ;;  %v91_v32 = vld [vmem:[%s317_s1] sm:$0xff]  ;;  %v92_v33 = vld [vmem:[%s317_s1 + $0x8] sm:$0xff]  ;;  %s182_s1 = smov [#allocation2]  }
  0x15   :  { %122 = vmatpush.msra.mxu3 %v37_v19  ;;  %78 = vmatpush.msra.mxu1 %v37_v19  ;;  %v47_v34 = vld [vmem:[%s316_s0] sm:$0xff]  ;;  %v48_v35 = vld [vmem:[%s316_s0 + $0x8] sm:$0xff]  ;;  %s139_s29 = sshll.u32 %s182_s1, 4  ;;  %s183_s0 = smov 128   ;;  %s140_s29 = int_to_ptr.vmem [resolvable:$true] %s139_s29 }
  0x16   :  { %103 = vmatpush.msra.mxu2 %v20_v20  ;;  %59 = vmatpush.msra.mxu0 %v20_v20 }
  0x17   :  { %123 = vmatpush.msra.mxu3 %v36_v21  ;;  %79 = vmatpush.msra.mxu1 %v36_v21 }
  0x18   :  { %104 = vmatpush.msra.mxu2 %v19_v22  ;;  %60 = vmatpush.msra.mxu0 %v19_v22 }
  0x19   :  { %124 = vmatpush.msra.mxu3 %v35_v23  ;;  %80 = vmatpush.msra.mxu1 %v35_v23 }
  0x1a   :  { %105 = vmatpush.msra.mxu2 %v18_v24  ;;  %61 = vmatpush.msra.mxu0 %v18_v24 }
  0x1b   :  { %125 = vmatpush.msra.mxu3 %v34_v25  ;;  %81 = vmatpush.msra.mxu1 %v34_v25 }
  0x1c   :  { %106 = vmatpush.msra.mxu2 %v17_v26  ;;  %62 = vmatpush.msra.mxu0 %v17_v26 }
  0x1d   :  { %126 = vmatpush.msra.mxu3 %v33_v27  ;;  %82 = vmatpush.msra.mxu1 %v33_v27 }
  0x1e   :  { %107 = vmatpush.msra.mxu2 %v16_v28  ;;  %63 = vmatpush.msra.mxu0 %v16_v28 }
  0x1f   :  { %127 = vmatpush.msra.mxu3 %v32_v29  ;;  %83 = vmatpush.msra.mxu1 %v32_v29 }
  0x20   :  { %108 = vmatpush.msra.mxu2 %v15_v30  ;;  %64 = vmatpush.msra.mxu0 %v15_v30 }
  0x21   :  { %128 = vmatpush.msra.mxu3 %v31_v31  ;;  %109 = vmatmul.f32.vlgmr.msra.gmra.mxu2 %v91_v32 }
  0x22   :  { %129 = vmatmul.f32.vlgmr.msra.gmra.mxu3 %v92_v33  ;;  %84 = vmatpush.msra.mxu1 %v31_v31 }
  0x23   :  { %65 = vmatmul.f32.vlgmr.msra.gmra.mxu0 %v47_v34  ;;  %85 = vmatmul.f32.vlgmr.msra.gmra.mxu1 %v48_v35 }
  0xa0   :  { %v66_v36 = vpop.f32.mrf.mxu0  ;;  %v86_v37 = vpop.f32.mrf.mxu1 }
  0xa1   :  { %v87_v38 = vadd.f32 %v86_v37, %v66_v36 }
  0xa3   :  { %90 = vst.msk [vmem:[#allocation2] sm:$0xff] %vm89_vm0, %v87_v38 }
  0xa4   :  { %v110_v39 = vpop.f32.mrf.mxu2 }
  0xa5   :  { %v130_v40 = vpop.f32.mrf.mxu3 }
  0xa6   :  { %v131_v41 = vadd.f32 %v130_v40, %v110_v39 }
  0xa8   :  { %134 = vst.msk [vmem:[#allocation2 + $0x8] sm:$0xff] %vm89_vm0, %v131_v41 }
  0xa9   :  { %147 = dma.vmem_to_hbm [thread:$0]  %s140_s29, 256, %s142_s5, [#allocation3], %s183_s0, %s183_s0, %s184_s6  }
  0xaa   :  { %180 = dma.done.wait [#allocation3], 256  }
  0xab   :  { %181 = vsyncadd [#allocation3], 4294967040 }
  0xac   :  { %152 = vsyncpa [#allocation3], 1 }

</bundles_post_ra>
